<compile_context>
chip_gen: v7x
topology: tpu7x:2x2x1
jax: 0.10.0
libtpu: 0.0.40
codegen_flags: <defaults>
</compile_context>

<pallas_src>
import functools

import jax
import jax.numpy as jnp
from jax.experimental import pallas as pl
from jax.experimental.pallas import tpu as pltpu


def _conv_bn_relu_kernel(x_ref, w_ref, scale_ref, bias_ref, o_ref, *, compute_dtype):
    # x_ref:     (C1, t_hw) f32 input slab (cast to bf16 here, not in a separate pass)
    # w_ref:     (C2, C1)   bf16 conv weight (unscaled)
    # scale_ref: (C2, 1)    f32 BN scale = gamma / sqrt(var + eps)
    # bias_ref:  (C2, 1)    f32 BN bias  = beta - mean * scale
    # o_ref:     (C2, t_hw) output slab
    x = x_ref[...].astype(compute_dtype)
    acc = jnp.dot(w_ref[...], x, preferred_element_type=jnp.float32)
    y = acc * scale_ref[...] + bias_ref[...]
    o_ref[...] = jnp.maximum(y, 0.0).astype(o_ref.dtype)


def _vmem_budget():
    """Return (tile budget bytes, vmem_limit_bytes, lane-tile cap) gated on chip VMEM."""
    try:
        vmem_cap = pltpu.get_tpu_info().vmem_capacity_bytes
    except Exception:
        vmem_cap = 64 << 20          # unknown -> assume the smallest (v7x, 64 MiB/TC)
    if vmem_cap >= (128 << 20):      # v5e / v6e: use the big VMEM for bigger tiles
        return 90 << 20, 100 << 20, 8192
    return 40 << 20, 48 << 20, 2048  # v7x: 64 MiB per TensorCore, stay conservative


def _pick_hw_tile(hw, c1, c2, x_bytes, out_bytes, vmem_budget, cap):
    """Largest spatial (lane) tile whose double-buffered tiles + weight fit the budget."""
    w_bytes = 2 * c2 * c1 * 2                        # resident bf16 weight (x2 headroom)
    budget = max(vmem_budget - w_bytes, 4 << 20)
    per_col = 2 * (c1 * x_bytes + c2 * out_bytes)    # double-buffered f32 in + out
    t = max(128, min((budget // per_col) // 128 * 128, cap))
    return hw if hw <= t else t


def conv_module_forward(x_nchw, conv_w, gamma, beta, running_mean, running_var,
                        eps=1e-3, compute_dtype=jnp.bfloat16,
                        out_dtype=jnp.float32, hw_tile=None):
    """Forward of ConvModule: 1x1 conv (no bias) + BN(eval, running stats) + ReLU.

    x_nchw:  (N, C1, H, W) float32
    conv_w:  (C2, C1, 1, 1) float32  (PyTorch Conv2d weight layout)
    gamma, beta, running_mean, running_var: (C2,) float32
    returns: (N, C2, H, W) out_dtype (default float32; bf16 halves HBM writeback)
    """
    N, C1, H, W = x_nchw.shape
    C2 = conv_w.shape[0]
    HW = H * W

    # BN (inference) folded to an f32 scale / bias column applied to the f32
    # accumulator in-kernel (scale is NOT baked into the bf16 weight).
    scale = (gamma / jnp.sqrt(running_var + eps)).astype(jnp.float32)
    bias = (beta - running_mean * scale).astype(jnp.float32)
    w_mat = conv_w.reshape(C2, C1).astype(compute_dtype)
    scale_col = scale.reshape(C2, 1)
    bias_col = bias.reshape(C2, 1)

    # NCHW -> (N, C1, H*W): free reshape, no transpose; input stays f32 in HBM.
    x = x_nchw.reshape(N, C1, HW)

    x_bytes = x.dtype.itemsize
    out_bytes = jnp.dtype(out_dtype).itemsize
    budget, vmem_limit, cap = _vmem_budget()

    if hw_tile is not None:
        # Guard user-supplied tiles: full extent, or a multiple of 128 (lane constraint).
        t_hw = HW if hw_tile >= HW else max(128, (hw_tile // 128) * 128)
    else:
        t_hw = _pick_hw_tile(HW, C1, C2, x_bytes, out_bytes, budget, cap)

    # Keep both TensorCores busy on v7x (and megacore parts): if the grid would be a
    # single program, split the spatial axis into (at least) two lane-dense tiles.
    if N * pl.cdiv(HW, t_hw) < 2 and HW >= 256:
        t_hw = max(128, ((HW // 2) // 128) * 128)

    grid = (N, pl.cdiv(HW, t_hw))   # ragged last spatial tile handled by Pallas masking

    kernel = functools.partial(_conv_bn_relu_kernel, compute_dtype=compute_dtype)

    cost = pl.CostEstimate(
        flops=2 * N * C1 * C2 * HW,
        transcendentals=0,
        bytes_accessed=(N * C1 * HW * x_bytes
                        + C2 * C1 * jnp.dtype(compute_dtype).itemsize
                        + 2 * C2 * 4
                        + N * C2 * HW * out_bytes),
    )

    out = pl.pallas_call(
        kernel,
        out_shape=jax.ShapeDtypeStruct((N, C2, HW), out_dtype),
        grid_spec=pltpu.PrefetchScalarGridSpec(
            num_scalar_prefetch=0,
            grid=grid,
            in_specs=[
                pl.BlockSpec((None, C1, t_hw), lambda n, j: (n, 0, j)),
                pl.BlockSpec((C2, C1), lambda n, j: (0, 0)),
                pl.BlockSpec((C2, 1), lambda n, j: (0, 0)),
                pl.BlockSpec((C2, 1), lambda n, j: (0, 0)),
            ],
            out_specs=pl.BlockSpec((None, C2, t_hw), lambda n, j: (n, 0, j)),
        ),
        compiler_params=pltpu.CompilerParams(
            dimension_semantics=("parallel", "parallel"),
            vmem_limit_bytes=vmem_limit,
        ),
        cost_estimate=cost,
    )(x, w_mat, scale_col, bias_col)

    return out.reshape(N, C2, H, W)


def _reference(x_nchw, conv_w, gamma, beta, running_mean, running_var, eps=1e-3):
    # Pure-JAX f32 reference (same math, no Pallas).
    N, C1, H, W = x_nchw.shape
    C2 = conv_w.shape[0]
    w = conv_w.reshape(C2, C1)
    y = jnp.einsum("nchw,oc->nohw", x_nchw, w)
    scale = (gamma / jnp.sqrt(running_var + eps)).reshape(1, C2, 1, 1)
    bias = (beta - running_mean * gamma / jnp.sqrt(running_var + eps)).reshape(1, C2, 1, 1)
    return jnp.maximum(y * scale + bias, 0.0)


if __name__ == "__main__":
    key = jax.random.PRNGKey(0)
    k_x, k_w, k_g, k_b, k_m, k_v = jax.random.split(key, 6)

    N, C1, C2, H, W = 2, 4, 8, 16, 16

    x = jax.random.normal(k_x, (N, C1, H, W), dtype=jnp.float32)
    conv_w = jax.random.normal(k_w, (C2, C1, 1, 1), dtype=jnp.float32) * 0.1
    gamma = jax.random.uniform(k_g, (C2,), minval=0.5, maxval=1.5, dtype=jnp.float32)
    beta = jax.random.normal(k_b, (C2,), dtype=jnp.float32) * 0.1
    running_mean = jax.random.normal(k_m, (C2,), dtype=jnp.float32) * 0.1
    running_var = jax.random.uniform(k_v, (C2,), minval=0.5, maxval=1.5, dtype=jnp.float32)

    # Main path: f32 output (matches the PyTorch module's dtype).
    out = conv_module_forward(x, conv_w, gamma, beta, running_mean, running_var)
    out = jax.block_until_ready(out)
    ref = _reference(x, conv_w, gamma, beta, running_mean, running_var)
    assert out.shape == (N, C2, H, W)
    # bf16 matmul operands (f32 accumulation) -> loosen tolerance vs f32 reference.
    assert jnp.allclose(out, ref, atol=2e-2, rtol=2e-2), "mismatch vs reference (f32 out)"

    # Ragged spatial tiles (HW % t_hw != 0) + bf16 output path.
    H2, W2 = 16, 20   # HW = 320, not a multiple of the forced 128-lane tile
    x2 = jax.random.normal(k_x, (1, C1, H2, W2), dtype=jnp.float32)
    out2 = conv_module_forward(x2, conv_w, gamma, beta, running_mean, running_var,
                               out_dtype=jnp.bfloat16, hw_tile=128)
    out2 = jax.block_until_ready(out2)
    ref2 = _reference(x2, conv_w, gamma, beta, running_mean, running_var)
    assert out2.shape == (1, C2, H2, W2)
    assert jnp.allclose(out2.astype(jnp.float32), ref2, atol=5e-2, rtol=5e-2), \
        "mismatch vs reference (ragged / bf16 out)"

    print("KERNEL_OK")
</pallas_src>

<mosaic_0001>
module attributes {stable_mosaic.version = 11 : i64} {
  func.func @_conv_bn_relu_kernel(%arg0: i32, %arg1: i32, %arg2: memref<1x4x256xf32, #tpu.memory_space<vmem>>, %arg3: memref<8x4xbf16, #tpu.memory_space<vmem>>, %arg4: memref<8x1xf32, #tpu.memory_space<vmem>>, %arg5: memref<8x1xf32, #tpu.memory_space<vmem>>, %arg6: memref<1x8x256xf32, #tpu.memory_space<vmem>>) attributes {dimension_semantics = [#tpu.dimension_semantics<parallel>, #tpu.dimension_semantics<parallel>], iteration_bounds = array<i64: 2, 1>, scalar_prefetch = 0 : i64, scratch_operands = 0 : i64, tpu.core_type = #tpu.core_type<tc>, window_params = [{transform_indices = @transform_0, window_bounds = array<i64: 1, 4, 256>}, {pipeline_mode = #tpu.pipeline_mode<synchronous>, transform_indices = @transform_1, window_bounds = array<i64: 8, 4>}, {pipeline_mode = #tpu.pipeline_mode<synchronous>, transform_indices = @transform_2, window_bounds = array<i64: 8, 1>}, {pipeline_mode = #tpu.pipeline_mode<synchronous>, transform_indices = @transform_3, window_bounds = array<i64: 8, 1>}, {transform_indices = @transform_4, window_bounds = array<i64: 1, 8, 256>}]} {
    %c0 = arith.constant 0 : index
    %c0_0 = arith.constant 0 : index
    %c0_1 = arith.constant 0 : index
    %0 = vector.load %arg2[%c0, %c0_0, %c0_1] : memref<1x4x256xf32, #tpu.memory_space<vmem>>, vector<1x4x256xf32>
    %1 = vector.shape_cast %0 : vector<1x4x256xf32> to vector<4x256xf32>
    %2 = arith.truncf %1 : vector<4x256xf32> to vector<4x256xbf16>
    %c0_2 = arith.constant 0 : index
    %c0_3 = arith.constant 0 : index
    %3 = vector.load %arg3[%c0_2, %c0_3] : memref<8x4xbf16, #tpu.memory_space<vmem>>, vector<8x4xbf16>
    %cst = arith.constant dense<0.000000e+00> : vector<8x256xf32>
    %4 = tpu.matmul %3, %2, %cst {dimension_numbers = #tpu.dot_dimension_numbers<[1], [0], [0], [1], [0, 0, 1, 1], [], []>} : vector<8x4xbf16>, vector<4x256xbf16>, vector<8x256xf32> -> vector<8x256xf32>
    %c0_4 = arith.constant 0 : index
    %c0_5 = arith.constant 0 : index
    %5 = vector.load %arg4[%c0_4, %c0_5] : memref<8x1xf32, #tpu.memory_space<vmem>>, vector<8x1xf32>
    %6 = vector.broadcast %5 : vector<8x1xf32> to vector<8x256xf32>
    %7 = arith.mulf %4, %6 : vector<8x256xf32>
    %c0_6 = arith.constant 0 : index
    %c0_7 = arith.constant 0 : index
    %8 = vector.load %arg5[%c0_6, %c0_7] : memref<8x1xf32, #tpu.memory_space<vmem>>, vector<8x1xf32>
    %9 = vector.broadcast %8 : vector<8x1xf32> to vector<8x256xf32>
    %10 = arith.addf %7, %9 : vector<8x256xf32>
    %cst_8 = arith.constant 0.000000e+00 : f32
    %11 = vector.broadcast %cst_8 : f32 to vector<8x256xf32>
    %12 = arith.maximumf %10, %11 : vector<8x256xf32>
    %c0_9 = arith.constant 0 : index
    %c0_10 = arith.constant 0 : index
    %c0_11 = arith.constant 0 : index
    %13 = vector.load %arg6[%c0_9, %c0_10, %c0_11] : memref<1x8x256xf32, #tpu.memory_space<vmem>>, vector<1x8x256xf32>
    %14 = vector.shape_cast %13 : vector<1x8x256xf32> to vector<8x256xf32>
    %15 = vector.shape_cast %12 : vector<8x256xf32> to vector<1x8x256xf32>
    tpu.vector_store %arg6[%c0_9, %c0_10, %c0_11], %15 {strides = array<i32>} : memref<1x8x256xf32, #tpu.memory_space<vmem>>, vector<1x8x256xf32>,
    return
  }
  func.func @transform_0(%arg0: i32, %arg1: i32) -> (i32, i32, i32) {
    %c0_i32 = arith.constant 0 : i32
    %c0_i32_0 = arith.constant 0 : i32
    return %arg0, %c0_i32, %arg1 : i32, i32, i32
  }
  func.func @transform_1(%arg0: i32, %arg1: i32) -> (i32, i32) {
    %c0_i32 = arith.constant 0 : i32
    %c0_i32_0 = arith.constant 0 : i32
    %c0_i32_1 = arith.constant 0 : i32
    return %c0_i32, %c0_i32_0 : i32, i32
  }
  func.func @transform_2(%arg0: i32, %arg1: i32) -> (i32, i32) {
    %c0_i32 = arith.constant 0 : i32
    %c0_i32_0 = arith.constant 0 : i32
    %c0_i32_1 = arith.constant 0 : i32
    return %c0_i32, %c0_i32_0 : i32, i32
  }
  func.func @transform_3(%arg0: i32, %arg1: i32) -> (i32, i32) {
    %c0_i32 = arith.constant 0 : i32
    %c0_i32_0 = arith.constant 0 : i32
    %c0_i32_1 = arith.constant 0 : i32
    return %c0_i32, %c0_i32_0 : i32, i32
  }
  func.func @transform_4(%arg0: i32, %arg1: i32) -> (i32, i32, i32) {
    %c0_i32 = arith.constant 0 : i32
    %c0_i32_0 = arith.constant 0 : i32
    return %arg0, %c0_i32, %arg1 : i32, i32, i32
  }
}

</mosaic_0001>

<bundles_post_ra>
// kernel: tpu_custom_call.1
= control target key start
LH: loop header
LB: loop body
LE: loop exit
PB: predicated region body
PF: predicated region fallthrough
CT: control target
= control target key end

     0   :  { %9 = vsyncpa [#allocation3], 0  ;;  %s703_s0 = inlined_call_operand.vmem [shape: f32[2,4,256], index: 0, kind: input, shape index: {}]   ;;  %s704_s1 = inlined_call_operand.vmem [shape: bf16[8,4], index: 1, kind: input, shape index: {}]   ;;  %s705_s2 = inlined_call_operand.vmem [shape: f32[8,1], index: 2, kind: input, shape index: {}]   ;;  %s706_s3 = inlined_call_operand.vmem [shape: f32[8,1], index: 3, kind: input, shape index: {}]   ;;  %s707_s4 = inlined_call_operand.hbm [shape: f32[2,8,256], index: 4, kind: output, shape index: {}]  }
   0x1   :  { %11 = vsyncpa [#allocation3 + $0x1], 0  ;;  %s582_s15 = smov 0   ;;  %s584_s16 = smov 0  }
   0x2   :  { %s586_s17 = smov 0   ;;  %s588_s18 = smov 0  }
   0x3   :  { %s590_s19 = smov 0   ;;  %s592_s20 = smov 0  }
   0x4 LB: > { %s400_s21 = sadd.s32 4294967295, %s553_s20   ;;  %s401_s22 = sadd.s32 4294967294, %s553_s20   ;;  %s553_s20 = sphi %s592_s20, %s17_s20   ;;  %s549_s19 = sphi %s590_s19, %s714_s19   ;;  %s545_s18 = sphi %s588_s18, %s713_s18   ;;  %s541_s17 = sphi %s586_s17, %s712_s17   ;;  %s537_s16 = sphi %s584_s16, %s711_s16   ;;  %s533_s15 = sphi %s582_s15, %s710_s15  }
   0x5   : > { %s29_s23 = sadd.s32 1, %s549_s19  ;;  %s129_s24 = sadd.s32 1, %s541_s17 }
   0x6   : > { %p31_p0 = scmp.ge.s32.totalorder %s29_s23, 2  ;;  %p139_p1 = scmp.ne.s32.totalorder %s541_s17, %s537_s16 }
   0x7   : > { %p140_p2 = scmp.eq.s32.totalorder %s400_s21, 1  ;;  %p145_p3 = scmp.ne.s32.totalorder %s537_s16, %s533_s15 }
   0x8   : > { %s716_s23 = smov (%p31_p0, %s29_s23), 0  ;;  %p146_p5 = scmp.eq.s32.totalorder %s401_s22, 1 }
   0x9   : > { %p622_p4 = por %p140_p2, %p139_p1  ;;  %s124_s26 = ssub.s32 %s549_s19, %s716_s23 }
   0xa   : > { %p404_p6 = scmp.ge.s32.totalorder %s553_s20, 1  ;;  %p127_p7 = scmp.eq.s32.totalorder %s124_s26, 0 }
   0xb   : > { %p629_p8 = por %p146_p5, %p145_p3  ;;  %p186_p9 = scmp.lt.s32.totalorder %s553_s20, 3 }
   0xc   : > { %s635_s28 = scalar_select %p127_p7, %s541_s17, %s129_s24  }
   0xd   : > { %p187_p10 = pnand %p404_p6, %p186_p9 }
   0xe   : > { %p217_p11 = scmp.lt.s32.totalorder (!%p187_p10), %s545_s18, 1  ;;  %v555_v0 = vmov (!%p187_p10), 0   ;;  %v287_v1 = vld [vmem:[%s705_s2] sm:$0xff] (!%p187_p10)  ;;  %vm239_vm0 = vcmask (!%p187_p10), 1041408   ;;  %vm235_vm1 = vcmask (!%p187_p10), 31744   ;;  %s213_s14 = sand.u32 (!%p187_p10), 1, %s537_s16  }
   0xf   : > { %190 = sbr.rel (%p187_p10) target bundleno = 268 (0x10c), region = 36  ;;  %278 = vmatprep.mubr.bf16.mxu0 (!%p187_p10), %v555_v0  ;;  %473 = vset.pattern.permute.xlu0 (!%p187_p10), %v555_v0  ;;  %v295_v2 = vld [vmem:[%s706_s3] sm:$0xff] (!%p187_p10)  ;;  %s405_s21 = sshll.u32 (!%p187_p10), %s213_s14, 4 }
  0x10   : > { %290 = vperm.xlu0 (!%p187_p10), %473, %v287_v1   ;;  %v234_v8 = vld [vmem:[%s704_s1] sm:$0xf] (!%p187_p10)  ;;  %s416_s22 = sshll.u32 (!%p187_p10), %s545_s18, 8  ;;  %s215_s24 = scalar_lea.vmem (!%p187_p10), [#allocation2], %s405_s21 }
  0x11   : > { %s324_s26 = sshll.u32 (!%p187_p10), %s215_s24, 4  ;;  %s308_s6 = scalar_lea.sflag (!%p187_p10), [#allocation3], %s213_s14  ;;  %s658_s26 = int_to_ptr.vmem [resolvable:$true] %s324_s26 }
  0x12   : > { %s475_s7 = scalar_lea.vmem (!%p187_p10), %s658_s26, 256 }
  0x13   : > { %p476_p12 = scmp.ne.s32.totalorder (!%p187_p10), %s658_s26, %s475_s7 }
  0x14   : > { %298 = vperm.xlu0 (!%p187_p10), %473, %v295_v2  }
  0x15   : > { %p477_p13 = pnand (!%p187_p10), %p476_p12, %p622_p4 }
  0x16   : > { %s218_s5 = scalar_select %p217_p11, %s545_s18, 1 }
  0x17   : > { %p478_p0 = pneg %p477_p13  ;;  %s556_s18 = smov [#allocation2]  }
  0x18   : > { %s415_s8 = sshll.u32 %s218_s5, 3  ;;  %s656_s5 = scalar_lea.hbm %s707_s4, %s416_s22 }
  0x19   : > { %s224_s11 = scalar_lea.vmem %s703_s0, %s415_s8  ;;  %s479_s8 = sshll.u32 %s556_s18, 4  ;;  %s480_s8 = int_to_ptr.vmem [resolvable:$false] %s479_s8 }
  0x1a   : > { %v228_v3 = vld [vmem:[%s224_s11] sm:$0xff]  ;;  %s481_s9 = scalar_lea.vmem %s480_s8, 512  ;;  %p482_p1 = scmp.lt.s32.totalorder %s658_s26, %s480_s8 }
  0x1b   : > { %v230_v4 = vcombine.high %v228_v3, %v228_v3  ;;  %v232_v5 = vpack.c.bf16 %v228_v3, %v228_v3  ;;  %p483_p2 = scmp.lt.s32.totalorder %s481_s9, %s475_s7 }
  0x1d   : > { %v233_v6 = vpack.c.bf16 %v230_v4, %v230_v4  ;;  %v241_v7 = vsel %vm239_vm0, %v232_v5, 0  ;;  %p484_p3 = por %p483_p2, %p482_p1 }
  0x1f   : > { %408 = vmatprep.subr.msk.bf16.mxu0 %vm239_vm0, %v233_v6  ;;  %p485_p5 = pnand %p484_p3, %p478_p0 }
  0x20   : > { %247 = vmatpush1.bf16.msra.mxu0 %v241_v7 }
  0x23   : > { %409 = vmatmul.mubr.msk.bf16.vlgmr.msra.gmra.mrb[0].mxu0 %vm235_vm1, %v234_v8 }
  0x8f   : > { %v291_v9 = vpop.permute.xlu0 %290 }
  0x93   : > { %v299_v13 = vpop.permute.xlu0 %298 }
  0xf6   : > { %v280_v10 = vpop.f32.mrb[0].mxu0 }
  0xf7   : > { %v293_v11 = vmul.f32 %v291_v9, %v280_v10  ;;  %v282_v12 = vpop.f32.mrb[1].mxu0 }
  0xf8   : > { %v294_v14 = vmul.f32 %v291_v9, %v282_v12  ;;  %v284_v15 = vpop.f32.mrb[2].mxu0 }
  0xf9   : > { %v301_v16 = vadd.f32 %v299_v13, %v293_v11  ;;  %v285_v17 = vpop.f32.mrb[3].mxu0 }
  0xfa   : > { %v302_v18 = vadd.f32 %v299_v13, %v294_v14 }
  0xfb   : > { %v303_v19 = vmax.f32 %v301_v16, 0.0 }
  0xfc   : > { %v304_v20 = vmax.f32 %v302_v18, 0.0 }
  0xfd   : > { %305 = vst [vmem:[%s215_s24] sm:$0xff] %v303_v19 }
  0xfe   : > { %306 = vst [vmem:[%s215_s24 + $0x8] sm:$0xff] %v304_v20 }
  0xff   : > { %488 = shalt.err (!%p485_p5)
}
 0x100   : > { %s489_s10 = scalar_lea.hbm %s656_s5, 256  ;;  %s493_s13 = scalar_lea.hbm %s707_s4, 512 }
 0x101   : > { %p490_p6 = scmp.ne.s32.totalorder %s656_s5, %s489_s10  ;;  %p494_p10 = scmp.lt.u32.totalorder %s656_s5, %s707_s4 }
 0x102   : > { %p495_p11 = scmp.lt.u32.totalorder %s493_s13, %s489_s10  ;;  %p497_p13 = scmp.lt.u32.totalorder %s489_s10, %s656_s5 }
 0x103   : > { %p491_p7 = pnand %p490_p6, %p622_p4 }
 0x104   : > { %p496_p12 = por %p495_p11, %p494_p10 }
 0x105   : > { %p492_p9 = pneg %p491_p7 }
 0x106   : > { %p498_p0 = por %p497_p13, %p496_p12 }
 0x108   : > { %p499_p1 = pnand %p498_p0, %p492_p9 }
 0x10a   : > { %502 = shalt.err (!%p499_p1)
}
 0x10b   : > { %417 = dma.vmem_to_hbm [thread:$0]  (%p622_p4), %s658_s26, 256, %s656_s5, %s308_s6  }
 0x10c PF: > { %p423_p2 = scmp.ge.s32.totalorder %s553_s20, 2  ;;  %s336_s22 = sand.u32 1, %s533_s15  }
 0x10d   : > { %s337_s24 = scalar_lea.sflag [#allocation3], %s336_s22 }
 0x10e   : > { %p420_p3 = pnand %p423_p2, %p629_p8 }
 0x110   : > { %528 = dma.done.wait (!%p420_p3), %s337_s24, 256  }
 0x111   : > { %530 = vsyncadd (!%p420_p3), %s337_s24, 4294967040  ;;  %s17_s20 = sadd.s32 1, %s553_s20   ;;  %s710_s15 = smov %s537_s16 }
 0x112   : > { %p14_p5 = scmp.ge.s32.totalorder %s17_s20, 4   ;;  %s711_s16 = smov %s541_s17 }
 0x113   : > { %s712_s17 = smov %s635_s28  ;;  %s713_s18 = smov %s549_s19 }
 0x114   : > { %s714_s19 = smov %s716_s23  ;;  %16 = sbr.rel (!%p14_p5) target bundleno = 4 (0x4), region = 71 }
 0x11b   :  { %342 = vsyncpa [#allocation3], 1 }
 0x11c   :  { %344 = vsyncpa [#allocation3 + $0x1], 1 }

</bundles_post_ra>
